<compile_context>
chip_gen: v7x
topology: tpu7x:2x2x1
jax: 0.10.0
libtpu: 0.0.40
codegen_flags: <defaults>
</compile_context>

<pallas_src>
import math

import jax
import jax.numpy as jnp
from jax import lax
from jax.experimental import pallas as pl
from jax.experimental.pallas import tpu as pltpu


# ------------------------------ Pallas kernels ------------------------------ #
def _conv_bias_kernel(p_ref, w_ref, b_ref, o_ref):
    # p_ref: (Kd, TM) bf16   w_ref: (Cout, Kd) bf16   b_ref: (Cout, 1) f32
    acc = jnp.dot(w_ref[...], p_ref[...], preferred_element_type=jnp.float32)
    o_ref[...] = (acc + b_ref[...]).astype(o_ref.dtype)


def _conv_bias_gdn_kernel(p_ref, w_ref, b_ref, g_ref, bt_ref, o_ref):
    # conv + bias (f32 accum) then GDN: x / sqrt(beta + gamma @ x^2), all fused.
    acc = jnp.dot(w_ref[...], p_ref[...], preferred_element_type=jnp.float32)
    acc = acc + b_ref[...]
    norm = jnp.dot(g_ref[...], acc * acc,
                   preferred_element_type=jnp.float32) + bt_ref[...]
    o_ref[...] = (acc * lax.rsqrt(norm)).astype(o_ref.dtype)


# ------------------------------ layer wrapper ------------------------------- #
def _pick_tile(m_pad, tm):
    """Pick a lane-aligned M tile; prefer >=2 grid steps (v7x has 2 TCs)."""
    t = min(tm, m_pad)
    if t == m_pad and m_pad >= 256:
        t = m_pad // 2
    t = max(128, (t // 128) * 128)
    while m_pad % t:          # m_pad is a multiple of 128 -> terminates at 128
        t -= 128
    return t


def _im2col_s2(x_cnhw, K, stride, padding, h_out, w_out):
    """im2col in (Cin*K*K, N*Hout*Wout) layout (contraction dim on sublanes)."""
    c, n = x_cnhw.shape[0], x_cnhw.shape[1]
    xp = jnp.pad(x_cnhw, ((0, 0), (0, 0),
                          (padding, padding), (padding, padding)))
    taps = [xp[:, :, ky:ky + (h_out - 1) * stride + 1:stride,
               kx:kx + (w_out - 1) * stride + 1:stride]
            for ky in range(K) for kx in range(K)]
    pat = jnp.stack(taps, axis=1)                     # (C, K*K, N, Ho, Wo)
    return pat.reshape(c * K * K, n * h_out * w_out)


def conv_gdn_layer(x_cnhw, w, b, gdn_gamma=None, gdn_beta=None, *,
                   stride=2, padding=1, tm=512):
    """Conv2d(K=3, stride=2, pad=1) + optional GDN, activations in CNHW."""
    cin, n, h, wdt = x_cnhw.shape
    cout, _, K, _ = w.shape
    h_out = (h + 2 * padding - K) // stride + 1
    w_out = (wdt + 2 * padding - K) // stride + 1
    m = n * h_out * w_out

    patches = _im2col_s2(x_cnhw.astype(jnp.bfloat16), K, stride, padding,
                         h_out, w_out)                # (Kd, M) bf16
    kd = patches.shape[0]
    m_pad = max(128, ((m + 127) // 128) * 128)        # lane alignment only
    if m_pad != m:
        patches = jnp.pad(patches, ((0, 0), (0, m_pad - m)))

    w_mat = w.reshape(cout, kd).astype(jnp.bfloat16)
    b_col = b.reshape(cout, 1).astype(jnp.float32)

    tmm = _pick_tile(m_pad, tm)
    grid = (m_pad // tmm,)

    in_specs = [
        pl.BlockSpec((kd, tmm), lambda i: (0, i)),     # im2col tile (lanes = M)
        pl.BlockSpec((cout, kd), lambda i: (0, 0)),    # conv weights
        pl.BlockSpec((cout, 1), lambda i: (0, 0)),     # bias
    ]
    inputs = [patches, w_mat, b_col]
    if gdn_gamma is not None:
        in_specs += [
            pl.BlockSpec((cout, cout), lambda i: (0, 0)),  # GDN gamma
            pl.BlockSpec((cout, 1), lambda i: (0, 0)),     # GDN beta
        ]
        inputs += [gdn_gamma.astype(jnp.float32),
                   gdn_beta.reshape(cout, 1).astype(jnp.float32)]
        kernel = _conv_bias_gdn_kernel
    else:
        kernel = _conv_bias_kernel

    out = pl.pallas_call(
        kernel,
        out_shape=jax.ShapeDtypeStruct((cout, m_pad), jnp.float32),
        grid_spec=pltpu.PrefetchScalarGridSpec(
            num_scalar_prefetch=0,
            grid=grid,
            in_specs=in_specs,
            out_specs=pl.BlockSpec((cout, tmm), lambda i: (0, i)),
        ),
        compiler_params=pltpu.CompilerParams(
            dimension_semantics=("parallel",)),
    )(*inputs)
    return out[:, :m].reshape(cout, n, h_out, w_out)


# ------------------------------ GDN parameters ------------------------------ #
_REPARAM_OFFSET = 2.0 ** -18
_BETA_MIN = 1e-6
_PEDESTAL = _REPARAM_OFFSET ** 2


def init_gdn_params(ch):
    beta = jnp.sqrt(jnp.ones((ch,), jnp.float32) + _PEDESTAL)
    gamma = jnp.sqrt(0.1 * jnp.eye(ch, dtype=jnp.float32) + _PEDESTAL)
    return beta, gamma


def gdn_effective(beta_param, gamma_param):
    """PyTorch-GDN reparameterization (LowerBound clamp + square - pedestal)."""
    beta_bound = (_BETA_MIN + _PEDESTAL) ** 0.5
    gamma_bound = _REPARAM_OFFSET
    beta = jnp.maximum(beta_param, beta_bound) ** 2 - _PEDESTAL
    gamma = jnp.maximum(gamma_param, gamma_bound) ** 2 - _PEDESTAL
    return beta, gamma


# ---------------------------- module parameters ----------------------------- #
def _xavier_normal_conv(key, shape, gain):
    # PyTorch Conv2d weight (Cout, Cin, K, K): fan_in = Cin*K*K, fan_out = Cout*K*K
    cout, cin, kh, kw = shape
    fan_in, fan_out = cin * kh * kw, cout * kh * kw
    std = gain * math.sqrt(2.0 / (fan_in + fan_out))
    return std * jax.random.normal(key, shape, dtype=jnp.float32)


def init_mv_encoder_params(key, in_channel, out_channel):
    k1, k2, k3, k4 = jax.random.split(key, 4)
    g1 = math.sqrt(2 * (in_channel + out_channel) / (in_channel + in_channel))
    g2 = math.sqrt(2.0)
    g4 = math.sqrt(2 * (out_channel + out_channel) / (out_channel + out_channel))
    p = {
        "w1": _xavier_normal_conv(k1, (out_channel, in_channel, 3, 3), g1),
        "b1": jnp.full((out_channel,), 0.01, jnp.float32),
        "w2": _xavier_normal_conv(k2, (out_channel, out_channel, 3, 3), g2),
        "b2": jnp.full((out_channel,), 0.01, jnp.float32),
        "w3": _xavier_normal_conv(k3, (out_channel, out_channel, 3, 3), g2),
        "b3": jnp.full((out_channel,), 0.01, jnp.float32),
        "w4": _xavier_normal_conv(k4, (out_channel, out_channel, 3, 3), g4),
        "b4": jnp.full((out_channel,), 0.01, jnp.float32),
    }
    for i in (1, 2, 3):
        beta, gamma = init_gdn_params(out_channel)
        p[f"gdn{i}_beta"] = beta
        p[f"gdn{i}_gamma"] = gamma
    return p


def mv_encoder_forward(x_nchw, params):
    x = jnp.transpose(x_nchw, (1, 0, 2, 3))             # NCHW -> CNHW
    for i in (1, 2, 3):
        beta_eff, gamma_eff = gdn_effective(params[f"gdn{i}_beta"],
                                            params[f"gdn{i}_gamma"])
        x = conv_gdn_layer(x, params[f"w{i}"], params[f"b{i}"],
                           gamma_eff, beta_eff)
    x = conv_gdn_layer(x, params["w4"], params["b4"])    # conv4: no GDN
    return jnp.transpose(x, (1, 0, 2, 3))                # CNHW -> NCHW


# --------------------------------- reference -------------------------------- #
def _ref_forward(x_nchw, p):
    def conv(x, w, b):
        y = lax.conv_general_dilated(
            x, w, window_strides=(2, 2), padding=((1, 1), (1, 1)),
            dimension_numbers=("NCHW", "OIHW", "NCHW"))
        return y + b.reshape(1, -1, 1, 1)

    def gdn(x, beta_p, gamma_p):
        beta, gamma = gdn_effective(beta_p, gamma_p)
        norm = jnp.einsum("nchw,dc->ndhw", x * x, gamma) + beta.reshape(1, -1, 1, 1)
        return x / jnp.sqrt(norm)

    x = gdn(conv(x_nchw, p["w1"], p["b1"]), p["gdn1_beta"], p["gdn1_gamma"])
    x = gdn(conv(x, p["w2"], p["b2"]), p["gdn2_beta"], p["gdn2_gamma"])
    x = gdn(conv(x, p["w3"], p["b3"]), p["gdn3_beta"], p["gdn3_gamma"])
    return conv(x, p["w4"], p["b4"])


# ----------------------------------- main ------------------------------------ #
if __name__ == "__main__":
    key = jax.random.PRNGKey(0)
    k_x, k_p = jax.random.split(key)

    in_channel, out_channel = 4, 8
    N, H, W = 2, 32, 32
    x = jax.random.normal(k_x, (N, in_channel, H, W), dtype=jnp.float32)
    params = init_mv_encoder_params(k_p, in_channel, out_channel)

    y = jax.jit(mv_encoder_forward)(x, params)
    y = jax.block_until_ready(y)
    assert y.shape == (N, out_channel, H // 16, W // 16), y.shape

    y_ref = jax.block_until_ready(_ref_forward(x, params))
    max_err = float(jnp.max(jnp.abs(y - y_ref)))
    # bf16 matmul operands (f32 accumulation) over 4 layers -> a few % worst case
    assert jnp.allclose(y, y_ref, atol=5e-2, rtol=5e-2), max_err

    print("KERNEL_OK")
</pallas_src>

<mosaic_0001>
module attributes {stable_mosaic.version = 11 : i64} {
  func.func @_conv_bias_gdn_kernel(%arg0: i32, %arg1: memref<36x256xbf16, #tpu.memory_space<vmem>>, %arg2: memref<8x36xbf16, #tpu.memory_space<vmem>>, %arg3: memref<8x1xf32, #tpu.memory_space<vmem>>, %arg4: memref<8x8xf32, #tpu.memory_space<vmem>>, %arg5: memref<8x1xf32, #tpu.memory_space<vmem>>, %arg6: memref<8x256xf32, #tpu.memory_space<vmem>>) attributes {dimension_semantics = [#tpu.dimension_semantics<parallel>], iteration_bounds = array<i64: 2>, scalar_prefetch = 0 : i64, scratch_operands = 0 : i64, tpu.core_type = #tpu.core_type<tc>, window_params = [{transform_indices = @transform_0, window_bounds = array<i64: 36, 256>}, {pipeline_mode = #tpu.pipeline_mode<synchronous>, transform_indices = @transform_1, window_bounds = array<i64: 8, 36>}, {pipeline_mode = #tpu.pipeline_mode<synchronous>, transform_indices = @transform_2, window_bounds = array<i64: 8, 1>}, {pipeline_mode = #tpu.pipeline_mode<synchronous>, transform_indices = @transform_3, window_bounds = array<i64: 8, 8>}, {pipeline_mode = #tpu.pipeline_mode<synchronous>, transform_indices = @transform_4, window_bounds = array<i64: 8, 1>}, {transform_indices = @transform_5, window_bounds = array<i64: 8, 256>}]} {
    %c0 = arith.constant 0 : index
    %c0_0 = arith.constant 0 : index
    %0 = vector.load %arg2[%c0, %c0_0] : memref<8x36xbf16, #tpu.memory_space<vmem>>, vector<8x36xbf16>
    %c0_1 = arith.constant 0 : index
    %c0_2 = arith.constant 0 : index
    %1 = vector.load %arg1[%c0_1, %c0_2] : memref<36x256xbf16, #tpu.memory_space<vmem>>, vector<36x256xbf16>
    %cst = arith.constant dense<0.000000e+00> : vector<8x256xf32>
    %2 = tpu.matmul %0, %1, %cst {dimension_numbers = #tpu.dot_dimension_numbers<[1], [0], [0], [1], [0, 0, 1, 1], [], []>} : vector<8x36xbf16>, vector<36x256xbf16>, vector<8x256xf32> -> vector<8x256xf32>
    %c0_3 = arith.constant 0 : index
    %c0_4 = arith.constant 0 : index
    %3 = vector.load %arg3[%c0_3, %c0_4] : memref<8x1xf32, #tpu.memory_space<vmem>>, vector<8x1xf32>
    %4 = vector.broadcast %3 : vector<8x1xf32> to vector<8x256xf32>
    %5 = arith.addf %2, %4 : vector<8x256xf32>
    %c0_5 = arith.constant 0 : index
    %c0_6 = arith.constant 0 : index
    %6 = vector.load %arg4[%c0_5, %c0_6] : memref<8x8xf32, #tpu.memory_space<vmem>>, vector<8x8xf32>
    %7 = arith.mulf %5, %5 : vector<8x256xf32>
    %cst_7 = arith.constant dense<0.000000e+00> : vector<8x256xf32>
    %8 = tpu.matmul %6, %7, %cst_7 {dimension_numbers = #tpu.dot_dimension_numbers<[1], [0], [0], [1], [0, 0, 1, 1], [], []>} : vector<8x8xf32>, vector<8x256xf32>, vector<8x256xf32> -> vector<8x256xf32>
    %c0_8 = arith.constant 0 : index
    %c0_9 = arith.constant 0 : index
    %9 = vector.load %arg5[%c0_8, %c0_9] : memref<8x1xf32, #tpu.memory_space<vmem>>, vector<8x1xf32>
    %10 = vector.broadcast %9 : vector<8x1xf32> to vector<8x256xf32>
    %11 = arith.addf %8, %10 : vector<8x256xf32>
    %12 = math.rsqrt %11 : vector<8x256xf32>
    %13 = arith.mulf %5, %12 : vector<8x256xf32>
    %c0_10 = arith.constant 0 : index
    %c0_11 = arith.constant 0 : index
    %14 = vector.load %arg6[%c0_10, %c0_11] : memref<8x256xf32, #tpu.memory_space<vmem>>, vector<8x256xf32>
    tpu.vector_store %arg6[%c0_10, %c0_11], %13 {strides = array<i32>} : memref<8x256xf32, #tpu.memory_space<vmem>>, vector<8x256xf32>,
    return
  }
  func.func @transform_0(%arg0: i32) -> (i32, i32) {
    %c0_i32 = arith.constant 0 : i32
    %c0_i32_0 = arith.constant 0 : i32
    return %c0_i32, %arg0 : i32, i32
  }
  func.func @transform_1(%arg0: i32) -> (i32, i32) {
    %c0_i32 = arith.constant 0 : i32
    %c0_i32_0 = arith.constant 0 : i32
    %c0_i32_1 = arith.constant 0 : i32
    return %c0_i32, %c0_i32_0 : i32, i32
  }
  func.func @transform_2(%arg0: i32) -> (i32, i32) {
    %c0_i32 = arith.constant 0 : i32
    %c0_i32_0 = arith.constant 0 : i32
    %c0_i32_1 = arith.constant 0 : i32
    return %c0_i32, %c0_i32_0 : i32, i32
  }
  func.func @transform_3(%arg0: i32) -> (i32, i32) {
    %c0_i32 = arith.constant 0 : i32
    %c0_i32_0 = arith.constant 0 : i32
    %c0_i32_1 = arith.constant 0 : i32
    return %c0_i32, %c0_i32_0 : i32, i32
  }
  func.func @transform_4(%arg0: i32) -> (i32, i32) {
    %c0_i32 = arith.constant 0 : i32
    %c0_i32_0 = arith.constant 0 : i32
    %c0_i32_1 = arith.constant 0 : i32
    return %c0_i32, %c0_i32_0 : i32, i32
  }
  func.func @transform_5(%arg0: i32) -> (i32, i32) {
    %c0_i32 = arith.constant 0 : i32
    %c0_i32_0 = arith.constant 0 : i32
    return %c0_i32, %arg0 : i32, i32
  }
}

module attributes {stable_mosaic.version = 11 : i64} {
  func.func @_conv_bias_gdn_kernel(%arg0: i32, %arg1: memref<72x128xbf16, #tpu.memory_space<vmem>>, %arg2: memref<8x72xbf16, #tpu.memory_space<vmem>>, %arg3: memref<8x1xf32, #tpu.memory_space<vmem>>, %arg4: memref<8x8xf32, #tpu.memory_space<vmem>>, %arg5: memref<8x1xf32, #tpu.memory_space<vmem>>, %arg6: memref<8x128xf32, #tpu.memory_space<vmem>>) attributes {dimension_semantics = [#tpu.dimension_semantics<parallel>], iteration_bounds = array<i64: 1>, scalar_prefetch = 0 : i64, scratch_operands = 0 : i64, tpu.core_type = #tpu.core_type<tc>, window_params = [{transform_indices = @transform_0, window_bounds = array<i64: 72, 128>}, {pipeline_mode = #tpu.pipeline_mode<synchronous>, transform_indices = @transform_1, window_bounds = array<i64: 8, 72>}, {pipeline_mode = #tpu.pipeline_mode<synchronous>, transform_indices = @transform_2, window_bounds = array<i64: 8, 1>}, {pipeline_mode = #tpu.pipeline_mode<synchronous>, transform_indices = @transform_3, window_bounds = array<i64: 8, 8>}, {pipeline_mode = #tpu.pipeline_mode<synchronous>, transform_indices = @transform_4, window_bounds = array<i64: 8, 1>}, {transform_indices = @transform_5, window_bounds = array<i64: 8, 128>}]} {
    %c0 = arith.constant 0 : index
    %c0_0 = arith.constant 0 : index
    %0 = vector.load %arg2[%c0, %c0_0] : memref<8x72xbf16, #tpu.memory_space<vmem>>, vector<8x72xbf16>
    %c0_1 = arith.constant 0 : index
    %c0_2 = arith.constant 0 : index
    %1 = vector.load %arg1[%c0_1, %c0_2] : memref<72x128xbf16, #tpu.memory_space<vmem>>, vector<72x128xbf16>
    %cst = arith.constant dense<0.000000e+00> : vector<8x128xf32>
    %2 = tpu.matmul %0, %1, %cst {dimension_numbers = #tpu.dot_dimension_numbers<[1], [0], [0], [1], [0, 0, 1, 1], [], []>} : vector<8x72xbf16>, vector<72x128xbf16>, vector<8x128xf32> -> vector<8x128xf32>
    %c0_3 = arith.constant 0 : index
    %c0_4 = arith.constant 0 : index
    %3 = vector.load %arg3[%c0_3, %c0_4] : memref<8x1xf32, #tpu.memory_space<vmem>>, vector<8x1xf32>
    %4 = vector.broadcast %3 : vector<8x1xf32> to vector<8x128xf32>
    %5 = arith.addf %2, %4 : vector<8x128xf32>
    %c0_5 = arith.constant 0 : index
    %c0_6 = arith.constant 0 : index
    %6 = vector.load %arg4[%c0_5, %c0_6] : memref<8x8xf32, #tpu.memory_space<vmem>>, vector<8x8xf32>
    %7 = arith.mulf %5, %5 : vector<8x128xf32>
    %cst_7 = arith.constant dense<0.000000e+00> : vector<8x128xf32>
    %8 = tpu.matmul %6, %7, %cst_7 {dimension_numbers = #tpu.dot_dimension_numbers<[1], [0], [0], [1], [0, 0, 1, 1], [], []>} : vector<8x8xf32>, vector<8x128xf32>, vector<8x128xf32> -> vector<8x128xf32>
    %c0_8 = arith.constant 0 : index
    %c0_9 = arith.constant 0 : index
    %9 = vector.load %arg5[%c0_8, %c0_9] : memref<8x1xf32, #tpu.memory_space<vmem>>, vector<8x1xf32>
    %10 = vector.broadcast %9 : vector<8x1xf32> to vector<8x128xf32>
    %11 = arith.addf %8, %10 : vector<8x128xf32>
    %12 = math.rsqrt %11 : vector<8x128xf32>
    %13 = arith.mulf %5, %12 : vector<8x128xf32>
    %c0_10 = arith.constant 0 : index
    %c0_11 = arith.constant 0 : index
    %14 = vector.load %arg6[%c0_10, %c0_11] : memref<8x128xf32, #tpu.memory_space<vmem>>, vector<8x128xf32>
    tpu.vector_store %arg6[%c0_10, %c0_11], %13 {strides = array<i32>} : memref<8x128xf32, #tpu.memory_space<vmem>>, vector<8x128xf32>,
    return
  }
  func.func @transform_0(%arg0: i32) -> (i32, i32) {
    %c0_i32 = arith.constant 0 : i32
    %c0_i32_0 = arith.constant 0 : i32
    return %c0_i32, %arg0 : i32, i32
  }
  func.func @transform_1(%arg0: i32) -> (i32, i32) {
    %c0_i32 = arith.constant 0 : i32
    %c0_i32_0 = arith.constant 0 : i32
    %c0_i32_1 = arith.constant 0 : i32
    return %c0_i32, %c0_i32_0 : i32, i32
  }
  func.func @transform_2(%arg0: i32) -> (i32, i32) {
    %c0_i32 = arith.constant 0 : i32
    %c0_i32_0 = arith.constant 0 : i32
    %c0_i32_1 = arith.constant 0 : i32
    return %c0_i32, %c0_i32_0 : i32, i32
  }
  func.func @transform_3(%arg0: i32) -> (i32, i32) {
    %c0_i32 = arith.constant 0 : i32
    %c0_i32_0 = arith.constant 0 : i32
    %c0_i32_1 = arith.constant 0 : i32
    return %c0_i32, %c0_i32_0 : i32, i32
  }
  func.func @transform_4(%arg0: i32) -> (i32, i32) {
    %c0_i32 = arith.constant 0 : i32
    %c0_i32_0 = arith.constant 0 : i32
    %c0_i32_1 = arith.constant 0 : i32
    return %c0_i32, %c0_i32_0 : i32, i32
  }
  func.func @transform_5(%arg0: i32) -> (i32, i32) {
    %c0_i32 = arith.constant 0 : i32
    %c0_i32_0 = arith.constant 0 : i32
    return %c0_i32, %arg0 : i32, i32
  }
}

module attributes {stable_mosaic.version = 11 : i64} {
  func.func @_conv_bias_kernel(%arg0: i32, %arg1: memref<72x128xbf16, #tpu.memory_space<vmem>>, %arg2: memref<8x72xbf16, #tpu.memory_space<vmem>>, %arg3: memref<8x1xf32, #tpu.memory_space<vmem>>, %arg4: memref<8x128xf32, #tpu.memory_space<vmem>>) attributes {dimension_semantics = [#tpu.dimension_semantics<parallel>], iteration_bounds = array<i64: 1>, scalar_prefetch = 0 : i64, scratch_operands = 0 : i64, tpu.core_type = #tpu.core_type<tc>, window_params = [{transform_indices = @transform_0, window_bounds = array<i64: 72, 128>}, {pipeline_mode = #tpu.pipeline_mode<synchronous>, transform_indices = @transform_1, window_bounds = array<i64: 8, 72>}, {pipeline_mode = #tpu.pipeline_mode<synchronous>, transform_indices = @transform_2, window_bounds = array<i64: 8, 1>}, {transform_indices = @transform_3, window_bounds = array<i64: 8, 128>}]} {
    %c0 = arith.constant 0 : index
    %c0_0 = arith.constant 0 : index
    %0 = vector.load %arg2[%c0, %c0_0] : memref<8x72xbf16, #tpu.memory_space<vmem>>, vector<8x72xbf16>
    %c0_1 = arith.constant 0 : index
    %c0_2 = arith.constant 0 : index
    %1 = vector.load %arg1[%c0_1, %c0_2] : memref<72x128xbf16, #tpu.memory_space<vmem>>, vector<72x128xbf16>
    %cst = arith.constant dense<0.000000e+00> : vector<8x128xf32>
    %2 = tpu.matmul %0, %1, %cst {dimension_numbers = #tpu.dot_dimension_numbers<[1], [0], [0], [1], [0, 0, 1, 1], [], []>} : vector<8x72xbf16>, vector<72x128xbf16>, vector<8x128xf32> -> vector<8x128xf32>
    %c0_3 = arith.constant 0 : index
    %c0_4 = arith.constant 0 : index
    %3 = vector.load %arg3[%c0_3, %c0_4] : memref<8x1xf32, #tpu.memory_space<vmem>>, vector<8x1xf32>
    %4 = vector.broadcast %3 : vector<8x1xf32> to vector<8x128xf32>
    %5 = arith.addf %2, %4 : vector<8x128xf32>
    %c0_5 = arith.constant 0 : index
    %c0_6 = arith.constant 0 : index
    %6 = vector.load %arg4[%c0_5, %c0_6] : memref<8x128xf32, #tpu.memory_space<vmem>>, vector<8x128xf32>
    tpu.vector_store %arg4[%c0_5, %c0_6], %5 {strides = array<i32>} : memref<8x128xf32, #tpu.memory_space<vmem>>, vector<8x128xf32>,
    return
  }
  func.func @transform_0(%arg0: i32) -> (i32, i32) {
    %c0_i32 = arith.constant 0 : i32
    %c0_i32_0 = arith.constant 0 : i32
    return %c0_i32, %arg0 : i32, i32
  }
  func.func @transform_1(%arg0: i32) -> (i32, i32) {
    %c0_i32 = arith.constant 0 : i32
    %c0_i32_0 = arith.constant 0 : i32
    %c0_i32_1 = arith.constant 0 : i32
    return %c0_i32, %c0_i32_0 : i32, i32
  }
  func.func @transform_2(%arg0: i32) -> (i32, i32) {
    %c0_i32 = arith.constant 0 : i32
    %c0_i32_0 = arith.constant 0 : i32
    %c0_i32_1 = arith.constant 0 : i32
    return %c0_i32, %c0_i32_0 : i32, i32
  }
  func.func @transform_3(%arg0: i32) -> (i32, i32) {
    %c0_i32 = arith.constant 0 : i32
    %c0_i32_0 = arith.constant 0 : i32
    return %c0_i32, %arg0 : i32, i32
  }
}

</mosaic_0001>

<bundles_post_ra>
// kernel: mv_encoder_forward.4
= control target key start
LH: loop header
LB: loop body
LE: loop exit
PB: predicated region body
PF: predicated region fallthrough
CT: control target
= control target key end

     0   :  { %s638_s18 = smov 0   ;;  %s640_s19 = smov 0   ;;  %s702_s0 = inlined_call_operand.vmem [shape: bf16[36,512], index: 0, kind: input, shape index: {}]   ;;  %s703_s1 = inlined_call_operand.vmem [shape: bf16[8,36], index: 1, kind: input, shape index: {}]   ;;  %s704_s2 = inlined_call_operand.vmem [shape: f32[8,1], index: 2, kind: input, shape index: {}]   ;;  %s705_s3 = inlined_call_operand.vmem [shape: f32[8,8], index: 3, kind: input, shape index: {}]   ;;  %s706_s4 = inlined_call_operand.vmem [shape: f32[8,1], index: 4, kind: input, shape index: {}]   ;;  %s707_s5 = inlined_call_operand.vmem [shape: f32[8,512], index: 5, kind: output, shape index: {}]  }
   0x1   :  { %s642_s20 = smov 0  }
   0x2 LB: > { %s520_s21 = sadd.s32 4294967295, %s604_s20   ;;  %s655_s22 = sadd.s32 1, %s604_s20   ;;  %s604_s20 = sphi %s642_s20, %s710_s20   ;;  %s600_s19 = sphi %s640_s19, %s709_s19   ;;  %s596_s18 = sphi %s638_s18, %s708_s18  }
   0x3   : > { %s19_s23 = ssub.s32 %s604_s20, %s655_s22  ;;  %s22_s24 = sadd.s32 1, %s600_s19 }
   0x4   : > { %p20_p0 = scmp.eq.s32.totalorder %s19_s23, 0  ;;  %p29_p1 = scmp.ne.s32.totalorder %s600_s19, %s596_s18 }
   0x5   : > { %p30_p2 = scmp.eq.s32.totalorder %s604_s20, 0  ;;  %p523_p4 = scmp.ge.s32.totalorder %s604_s20, 2 }
   0x6   : > { %s664_s25 = scalar_select %p20_p0, %s600_s19, %s22_s24  }
   0x7   : > { %p31_p3 = por %p30_p2, %p29_p1  ;;  %177 = sbr.rel (%p523_p4) target bundleno = 21 (0x15), region = 32 }
   0xe   : > { %180 = sbr.rel (!%p31_p3) target bundleno = 21 (0x15), region = 36  ;;  %s182_s26 = sand.u32 (%p31_p3), 1, %s600_s19  }
   0xf   : > { %s540_s27 = sshll.u32 (%p31_p3), %s604_s20, 3  ;;  %s541_s28 = smul.u32 (%p31_p3), 40, %s182_s26 }
  0x10   : > { %s187_s6 = scalar_lea.vmem (%p31_p3), %s702_s0, %s540_s27 }
  0x11   : > { %v223_v0 = vld [vmem:[%s187_s6] sm:$0xff] (%p31_p3)  ;;  %v225_v1 = vld [vmem:[%s187_s6 + $0x10] sm:$0xff] (%p31_p3)  ;;  %s184_s7 = scalar_lea.vmem (%p31_p3), [#allocation2], %s541_s28 }
  0x12   : > { %v227_v2 = vld [vmem:[%s187_s6 + $0x20] sm:$0xff] (%p31_p3)  ;;  %v229_v3 = vld [vmem:[%s187_s6 + $0x30] sm:$0xff] (%p31_p3)  ;;  %224 = vst [vmem:[%s184_s7] sm:$0xff] (%p31_p3), %v223_v0  ;;  %226 = vst [vmem:[%s184_s7 + $0x8] sm:$0xff] (%p31_p3), %v225_v1 }
  0x13   : > { %v231_v4 = vld [vmem:[%s187_s6 + $0x40] sm:$0xff] (%p31_p3)  ;;  %228 = vst [vmem:[%s184_s7 + $0x10] sm:$0xff] (%p31_p3), %v227_v2  ;;  %230 = vst [vmem:[%s184_s7 + $0x18] sm:$0xff] (%p31_p3), %v229_v3 }
  0x14   : > { %232 = vst [vmem:[%s184_s7 + $0x20] sm:$0xff] (%p31_p3), %v231_v4 }
  0x15 PF: > { %p526_p5 = scmp.ge.s32.totalorder %s604_s20, 1  ;;  %p237_p6 = scmp.lt.s32.totalorder %s604_s20, 3 }
  0x17   : > { %p238_p7 = pnand %p526_p5, %p237_p6 }
  0x18   : > { %s244_s8 = sand.u32 (!%p238_p7), 1, %s596_s18   ;;  %v606_v5 = vmov (!%p238_p7), 0   ;;  %v285_v6 = vld [vmem:[%s704_s2] sm:$0xff] (!%p238_p7)  ;;  %vm320_vm0 = vcmask (!%p238_p7), 1041408   ;;  %vm316_vm1 = vcmask (!%p238_p7), 293888   ;;  %v607_v17 = vmov (!%p238_p7), 0.0  }
  0x19   : > { %241 = sbr.rel (%p238_p7) target bundleno = 490 (0x1ea), region = 74  ;;  %359 = vmatprep.mubr.bf16.mxu0 (!%p238_p7), %v606_v5  ;;  %569 = vset.pattern.permute.xlu0 (!%p238_p7), %v606_v5  ;;  %v371_v7 = vld [vmem:[%s706_s4] sm:$0xff] (!%p238_p7)  ;;  %vm377_vm2 = vcmask (!%p238_p7), 64512   ;;  %s527_s23 = sshll.u32 (!%p238_p7), %s520_s21, 1 }
  0x1a   : > { %s542_s9 = smul.u32 (!%p238_p7), 40, %s244_s8  ;;  %288 = vperm.xlu0 (!%p238_p7), %569, %v285_v6   ;;  %v279_v16 = vld [vmem:[%s703_s1] sm:$0xf] (!%p238_p7)  ;;  %445 = vmatprep.mubr.f32.mxu1 (!%p238_p7), %v607_v17  ;;  %p273_p8 = scmp.lt.s32.totalorder (!%p238_p7), %s527_s23, 3 }
  0x1b   : > { %v368_v27 = vld [vmem:[%s705_s3] sm:$0xff] (!%p238_p7) }
  0x1c   : > { %s246_s14 = scalar_lea.vmem (!%p238_p7), [#allocation2], %s542_s9 }
  0x1d   : > { %v570_v8 = vld [vmem:[%s246_s14 + $0x4] ss:$8 sps:$4 sm:$0xff] (!%p238_p7)   ;;  %v572_v9 = vld [vmem:[%s246_s14] ss:$8 sps:$4 sm:$0xff] (!%p238_p7)   ;;  %v573_v10 = vld [vmem:[%s246_s14 + $0x14] ss:$8 sps:$4 sm:$0xff] (!%p238_p7)  }
  0x1e   : > { %327 = vmatprep.subr.bf16.mxu0 (!%p238_p7), %v570_v8  ;;  %v284_v11 = vld [vmem:[%s246_s14 + $0x20] sm:$0x33] (!%p238_p7)  ;;  %374 = vperm.xlu0 (!%p238_p7), %569, %v371_v7   ;;  %v575_v12 = vld [vmem:[%s246_s14 + $0x10] ss:$8 sps:$4 sm:$0xff] (!%p238_p7)  }
  0x1f   : > { %328 = vmatpush1.bf16.msra.mxu0 (!%p238_p7), %v572_v9  ;;  %v534_v13 = vcombine.high (!%p238_p7), %v284_v11, %v284_v11  ;;  %v533_v14 = vcombine.low (!%p238_p7), %v284_v11, %v284_v11 }
  0x20   : > { %329 = vmatprep.subr.bf16.mxu0 %v573_v10  ;;  %s712_s23 = smov (!%p273_p8, %s527_s23), 3 }
  0x21   : > { %v322_v15 = vsel %vm320_vm0, %v533_v14, 0  ;;  %s528_s24 = sshll.u32 %s712_s23, 3 }
  0x22   : > { %s276_s28 = scalar_lea.vmem %s707_s5, %s528_s24 }
  0x23   : > { %330 = vmatpush1.bf16.msra.mxu0 %v575_v12 }
  0x24   : > { %535 = vmatprep.subr.msk.bf16.mxu0 %vm320_vm0, %v534_v13 }
  0x27   : > { %332 = vmatpush1.bf16.msra.mxu0 %v322_v15 }
  0x2a   : > { %536 = vmatmul.mubr.msk.bf16.vlgmr.msra.gmra.mrb[0].mxu0 %vm316_vm1, %v279_v16 }
  0x99   : > { %v289_v18 = vpop.permute.xlu0 %288 }
  0x9d   : > { %v375_v28 = vpop.permute.xlu0 %374 }
  0xfd   : > { %v361_v19 = vpop.f32.mrb[0].mxu0 }
  0xfe   : > { %v362_v20 = vadd.f32 %v361_v19, %v289_v18  ;;  %v363_v21 = vpop.f32.mrb[1].mxu0 }
  0xff   : > { %v364_v22 = vadd.f32 %v363_v21, %v289_v18  ;;  %v365_v23 = vpop.f32.mrb[2].mxu0 }
 0x100   : > { %v366_v24 = vpop.f32.mrb[3].mxu0  ;;  %v369_v26 = vmul.f32 %v362_v20, %v362_v20 }
 0x101   : > { %v370_v25 = vmul.f32 %v364_v22, %v364_v22 }
 0x103   : > { %381 = vmatprep.subr.mxu1 %v370_v25 }
 0x104   : > { %382 = vmatpush1.msra.mxu1 %v369_v26 }
 0x105   : > { %537 = vmatmul.mubr.msk.f32.vlgmr.msra.gmra.mrb[0].mxu1 %vm377_vm2, %v368_v27 }
 0x1d8   : > { %v447_v29 = vpop.f32.mrb[0].mxu1 }
 0x1d9   : > { %v448_v30 = vadd.f32 %v447_v29, %v375_v28  ;;  %v449_v31 = vpop.f32.mrb[1].mxu1 }
 0x1da   : > { %v450_v32 = vadd.f32 %v449_v31, %v375_v28 }
 0x1db   : > { %578 = vrsqrt.f32 %v448_v30 }
 0x1dc   : > { %580 = vrsqrt.f32 %v450_v32 }
 0x1e5   : > { %v579_v33 = vpop.eup %578 }
 0x1e6   : > { %v581_v34 = vpop.eup %580  ;;  %v454_v35 = vmul.f32 %v579_v33, %v362_v20 }
 0x1e7   : > { %v455_v36 = vmul.f32 %v581_v34, %v364_v22 }
 0x1e8   : > { %456 = vst [vmem:[%s276_s28] sm:$0xff] %v454_v35 }
 0x1e9   : > { %457 = vst [vmem:[%s276_s28 + $0x8] sm:$0xff] %v455_v36 }
 0x1ea PF: > { %p12_p9 = scmp.ge.s32.totalorder %s655_s22, 4   ;;  %s708_s18 = smov %s600_s19 }
 0x1eb   : > { %s709_s19 = smov %s664_s25  ;;  %s710_s20 = smov %s655_s22 }
 0x1ec   :  { %14 = sbr.rel (!%p12_p9) target bundleno = 2 (0x2), region = 113 }

// kernel: mv_encoder_forward.5
= control target key start
LH: loop header
LB: loop body
LE: loop exit
PB: predicated region body
PF: predicated region fallthrough
CT: control target
= control target key end

     0   :  { %v246_v0 = vmov 0.0   ;;  %vm247_vm0 = vmmov 0   ;;  %v248_v2 = vmov 0   ;;  %vm68_vm1 = vcmask 1043456   ;;  %s309_s0 = inlined_call_operand.vmem [shape: bf16[72,128], index: 0, kind: input, shape index: {}]   ;;  %s310_s2 = inlined_call_operand.vmem [shape: f32[8,1], index: 2, kind: input, shape index: {}]   ;;  %s311_s4 = inlined_call_operand.vmem [shape: f32[8,1], index: 4, kind: input, shape index: {}]   ;;  %s312_s1 = inlined_call_operand.vmem [shape: bf16[8,72], index: 1, kind: input, shape index: {}]   ;;  %s313_s3 = inlined_call_operand.vmem [shape: f32[8,8], index: 3, kind: input, shape index: {}]   ;;  %s314_s5 = inlined_call_operand.vmem [shape: f32[8,128], index: 5, kind: output, shape index: {}]  }
   0x1   :  { %216 = vmatprep.subr.bf16.mxu0 %v246_v0  ;;  %v239_v1 = vld [vmem:[%s309_s0] sm:$0xff]   ;;  %226 = vmatprep.mubr.msk.bf16.mxu0 %vm247_vm0, %v246_v0  ;;  %v240_v3 = vld [vmem:[%s309_s0 + $0x8] sm:$0xff]   ;;  %v241_v5 = vld [vmem:[%s309_s0 + $0x10] sm:$0xff]   ;;  %vm64_vm2 = vcmask 588800   ;;  %vm120_vm3 = vcmask 64512  }
   0x2   :  { %238 = vset.pattern.permute.xlu0 %v248_v2  ;;  %230 = vmatprep.subr.mxu1 %v246_v0  ;;  %v31_v4 = vld [vmem:[%s310_s2] sm:$0xff]  ;;  %v242_v7 = vld [vmem:[%s309_s0 + $0x18] sm:$0xff]  }
   0x3   :  { %217 = vmatpush3.bf16.msra.mxu0 %v239_v1  ;;  %232 = vmatprep.mubr.msk.f32.mxu1 %vm247_vm0, %v246_v0  ;;  %v114_v6 = vld [vmem:[%s311_s4] sm:$0xff] }
   0x4   :  { %218 = vmatprep.subr.bf16.mxu0 %v246_v0  ;;  %34 = vperm.xlu0 %238, %v31_v4   ;;  %v243_v8 = vld [vmem:[%s309_s0 + $0x20] ss:$0 sps:$4 sm:$0xff]  }
   0x5   :  { %v70_v9 = vsel %vm68_vm1, %v243_v8, 0  ;;  %v21_v10 = vld [vmem:[%s312_s1] sm:$0xf] }
   0x6   :  { %v112_v18 = vld [vmem:[%s313_s3] sm:$0xff] }
   0x7   :  { %219 = vmatpush3.bf16.msra.mxu0 %v240_v3 }
   0x8   :  { %220 = vmatprep.subr.bf16.mxu0 %v246_v0  ;;  %117 = vperm.xlu0 %238, %v114_v6  }
   0xb   :  { %221 = vmatpush3.bf16.msra.mxu0 %v241_v5 }
   0xc   :  { %222 = vmatprep.subr.bf16.mxu0 %v246_v0 }
   0xf   :  { %223 = vmatpush3.bf16.msra.mxu0 %v242_v7 }
  0x10   :  { %224 = vmatprep.subr.bf16.mxu0 %v246_v0 }
  0x13   :  { %225 = vmatpush3.bf16.msra.mxu0 %v70_v9 }
  0x16   :  { %227 = vmatmul.mubr.msk.bf16.vlgmr.msra.gmra.mrb[0].mxu0 %vm64_vm2, %v21_v10 }
  0x83   :  { %v35_v11 = vpop.permute.xlu0 %34 }
  0x87   :  { %v118_v19 = vpop.permute.xlu0 %117 }
  0xe9   :  { %v106_v12 = vpop.f32.mrb[0].mxu0 }
  0xea   :  { %v107_v13 = vadd.f32 %v106_v12, %v35_v11  ;;  %v228_v14 = vpop.f32.mrb[1].mxu0 }
  0xeb   :  { %v109_v15 = vpop.f32.mrb[2].mxu0 }
  0xec   :  { %v229_v16 = vpop.f32.mrb[3].mxu0  ;;  %v113_v17 = vmul.f32 %v107_v13, %v107_v13 }
  0xee   :  { %231 = vmatpush3.msra.mxu1 %v113_v17 }
  0xef   :  { %233 = vmatmul.mubr.msk.f32.vlgmr.msra.gmra.mrb[0].mxu1 %vm120_vm3, %v112_v18 }
 0x1c2   :  { %v190_v20 = vpop.f32.mrb[0].mxu1 }
 0x1c3   :  { %v191_v21 = vadd.f32 %v190_v20, %v118_v19  ;;  %v234_v22 = vpop.f32.mrb[1].mxu1 }
 0x1c5   :  { %244 = vrsqrt.f32 %v191_v21 }
 0x1cf   :  { %v245_v23 = vpop.eup %244 }
 0x1d0   :  { %v195_v24 = vmul.f32 %v245_v23, %v107_v13 }
 0x1d2   :  { %196 = vst [vmem:[%s314_s5] sm:$0xff] %v195_v24 }

// kernel: mv_encoder_forward.7
= control target key start
LH: loop header
LB: loop body
LE: loop exit
PB: predicated region body
PF: predicated region fallthrough
CT: control target
= control target key end

     0   :  { %v146_v0 = vmov 0.0   ;;  %vm147_vm0 = vmmov 0   ;;  %v148_v2 = vmov 0   ;;  %vm62_vm1 = vcmask 1043456   ;;  %s193_s0 = inlined_call_operand.vmem [shape: bf16[72,128], index: 0, kind: input, shape index: {}]   ;;  %s194_s2 = inlined_call_operand.vmem [shape: f32[8,1], index: 2, kind: input, shape index: {}]   ;;  %s195_s1 = inlined_call_operand.vmem [shape: bf16[8,72], index: 1, kind: input, shape index: {}]   ;;  %s196_s3 = inlined_call_operand.vmem [shape: f32[8,128], index: 3, kind: output, shape index: {}]  }
   0x1   :  { %123 = vmatprep.subr.bf16.mxu0 %v146_v0  ;;  %v141_v1 = vld [vmem:[%s193_s0] sm:$0xff]   ;;  %133 = vmatprep.mubr.msk.bf16.mxu0 %vm147_vm0, %v146_v0  ;;  %v142_v3 = vld [vmem:[%s193_s0 + $0x8] sm:$0xff]   ;;  %v143_v5 = vld [vmem:[%s193_s0 + $0x10] sm:$0xff]   ;;  %vm58_vm2 = vcmask 588800  }
   0x2   :  { %140 = vset.pattern.permute.xlu0 %v148_v2  ;;  %124 = vmatpush3.bf16.msra.mxu0 %v141_v1  ;;  %v25_v4 = vld [vmem:[%s194_s2] sm:$0xff]  ;;  %v144_v6 = vld [vmem:[%s193_s0 + $0x18] sm:$0xff]  }
   0x3   :  { %125 = vmatprep.subr.bf16.mxu0 %v146_v0  ;;  %28 = vperm.xlu0 %140, %v25_v4   ;;  %v145_v7 = vld [vmem:[%s193_s0 + $0x20] ss:$0 sps:$4 sm:$0xff]  }
   0x4   :  { %v64_v8 = vsel %vm62_vm1, %v145_v7, 0  ;;  %v15_v9 = vld [vmem:[%s195_s1] sm:$0xf] }
   0x6   :  { %126 = vmatpush3.bf16.msra.mxu0 %v142_v3 }
   0x7   :  { %127 = vmatprep.subr.bf16.mxu0 %v146_v0 }
   0xa   :  { %128 = vmatpush3.bf16.msra.mxu0 %v143_v5 }
   0xb   :  { %129 = vmatprep.subr.bf16.mxu0 %v146_v0 }
   0xe   :  { %130 = vmatpush3.bf16.msra.mxu0 %v144_v6 }
   0xf   :  { %131 = vmatprep.subr.bf16.mxu0 %v146_v0 }
  0x12   :  { %132 = vmatpush3.bf16.msra.mxu0 %v64_v8 }
  0x15   :  { %134 = vmatmul.mubr.msk.bf16.vlgmr.msra.gmra.mrb[0].mxu0 %vm58_vm2, %v15_v9 }
  0x82   :  { %v29_v10 = vpop.permute.xlu0 %28 }
  0xe8   :  { %v100_v11 = vpop.f32.mrb[0].mxu0 }
  0xe9   :  { %v101_v12 = vadd.f32 %v100_v11, %v29_v10  ;;  %v135_v13 = vpop.f32.mrb[1].mxu0 }
  0xea   :  { %v103_v14 = vpop.f32.mrb[2].mxu0 }
  0xeb   :  { %106 = vst [vmem:[%s196_s3] sm:$0xff] %v101_v12  ;;  %v136_v15 = vpop.f32.mrb[3].mxu0 }

</bundles_post_ra>
